<compile_context>
chip_gen: v7x
topology: tpu7x:2x2x1
jax: 0.10.0
libtpu: 0.0.40
codegen_flags: <defaults>
</compile_context>

<pallas_src>
import numpy as np
import jax
import jax.numpy as jnp
from jax.experimental import pallas as pl
from jax.experimental.pallas import tpu as pltpu


# ----------------------------- tree structure ------------------------------
class Node:
    def __init__(self, idx, children=()):
        self.idx = idx
        self.children = list(children)
        self.num_children = len(self.children)


def build_topo_tables(root, k_max):
    """Flatten the tree into post-order (children before parents) tables."""
    order = []

    def rec(node):
        for ch in node.children:
            rec(ch)
        order.append(node)

    rec(root)
    T = len(order)
    pos = {node.idx: p for p, node in enumerate(order)}
    node_order = np.zeros((T,), np.int32)        # original node idx per topo pos
    child_pos = np.zeros((T, k_max), np.int32)   # topo position of each child
    child_idx = np.zeros((T, k_max), np.int32)   # original idx (for prob lookup)
    nchild = np.zeros((T,), np.int32)
    for p, node in enumerate(order):
        node_order[p] = node.idx
        nchild[p] = node.num_children
        for k, ch in enumerate(node.children):
            child_pos[p, k] = pos[ch.idx]
            child_idx[p, k] = ch.idx
    return node_order, child_pos, child_idx, nchild


# ------------------------------ Pallas kernel ------------------------------
def _make_tree_kernel(B, D, M, k_max):
    def kernel(child_pos_ref, nchild_ref,                 # scalar prefetch (SMEM, int32)
               prob_ref,                                  # SMEM (T, k_max) f32
               x_ref,                                     # VMEM (1, B, D)
               wpack_ref, bpack_ref, wfh_ref, bfh_ref,    # VMEM resident weights
               c_out_ref, h_out_ref,                      # VMEM (B, M) outputs (root)
               cstate_ref, hstate_ref,                    # VMEM (T, B, M) persistent state
               chsum_ref, fcsum_ref):                     # VMEM (B, M) temporaries
        n = pl.program_id(0)

        @pl.when(n == 0)
        def _init_state():
            cstate_ref[...] = jnp.zeros_like(cstate_ref)
            hstate_ref[...] = jnp.zeros_like(hstate_ref)

        nch = nchild_ref[n]
        x = x_ref[0]                                      # (B, D)

        # ---- weighted child_h sum (skipped entirely for leaves) ----
        chsum_ref[...] = jnp.zeros_like(chsum_ref)

        @pl.when(nch > 0)
        def _gather_children():
            acc = jnp.zeros((B, M), jnp.float32)
            for k in range(k_max):                        # static unroll, pw=0 for padding
                cidx = child_pos_ref[n, k]
                pw = prob_ref[n, k]
                acc = acc + hstate_ref[cidx] * pw
            chsum_ref[...] = acc

        # ---- single fused MXU push: [x | ch_sum] @ [Wx ; Wh] + b  -> (B, 4M) ----
        lhs = jnp.concatenate([x, chsum_ref[...]], axis=1)            # (B, D+M)
        z = jnp.dot(lhs, wpack_ref[...], preferred_element_type=jnp.float32)
        z = z + bpack_ref[...]                                        # (B, 4M) lane-dense
        i = jax.nn.sigmoid(z[:, 0 * M:1 * M])
        o = jax.nn.sigmoid(z[:, 1 * M:2 * M])
        u = jnp.tanh(z[:, 2 * M:3 * M])
        fx = z[:, 3 * M:4 * M]

        # ---- per-child forget gates + fc sum (skipped for leaves) ----
        fcsum_ref[...] = jnp.zeros_like(fcsum_ref)

        @pl.when(nch > 0)
        def _forget_gates():
            acc = jnp.zeros((B, M), jnp.float32)
            for k in range(k_max):
                cidx = child_pos_ref[n, k]
                pw = prob_ref[n, k]
                wh = hstate_ref[cidx] * pw                # weighted child h
                wc = cstate_ref[cidx] * pw                # weighted child c
                f = jax.nn.sigmoid(
                    jnp.dot(wh, wfh_ref[...], preferred_element_type=jnp.float32)
                    + bfh_ref[...] + fx)
                acc = acc + f * wc
            fcsum_ref[...] = acc

        c = i * u + fcsum_ref[...]
        h = o * jnp.tanh(c)

        # persist this node's state for its parent
        cstate_ref[n] = c
        hstate_ref[n] = h

        # root is last in topological order; output block has a constant index_map
        @pl.when(n == pl.num_programs(0) - 1)
        def _emit_root():
            c_out_ref[...] = c
            h_out_ref[...] = h

    return kernel


@jax.jit
def tree_lstm_forward_pallas(inputs, prob, params,
                             node_order, child_pos, child_idx, nchild):
    T = node_order.shape[0]
    _, B, D = inputs.shape
    M = params["W_fh"].shape[0]
    k_max = child_pos.shape[1]

    # gather node inputs in topological order (one device gather, no host loop)
    x_sorted = jnp.take(inputs, node_order, axis=0)                   # (T, B, D)

    # per-(node, child-slot) prob weights; zero for padded slots
    mask = (jnp.arange(k_max)[None, :] < nchild[:, None]).astype(jnp.float32)
    prob_tab = prob[node_order[:, None], child_idx] * mask            # (T, k_max)

    # ---- pack gate weights: one (D+M, 4M) matrix, one (1, 4M) fused bias ----
    Wx = jnp.concatenate([params["W_ioux"][0 * M:1 * M].T,
                          params["W_ioux"][1 * M:2 * M].T,
                          params["W_ioux"][2 * M:3 * M].T,
                          params["W_fx"].T], axis=1)                  # (D, 4M)
    Wh = jnp.concatenate([params["W_iouh"][0 * M:1 * M].T,
                          params["W_iouh"][1 * M:2 * M].T,
                          params["W_iouh"][2 * M:3 * M].T,
                          jnp.zeros((M, M), jnp.float32)], axis=1)    # (M, 4M)
    wpack = jnp.concatenate([Wx, Wh], axis=0)                         # (D+M, 4M)
    bpack = jnp.concatenate(
        [params["b_ioux"][0 * M:1 * M] + params["b_iouh"][0 * M:1 * M],
         params["b_ioux"][1 * M:2 * M] + params["b_iouh"][1 * M:2 * M],
         params["b_ioux"][2 * M:3 * M] + params["b_iouh"][2 * M:3 * M],
         params["b_fx"]], axis=0).reshape(1, 4 * M)
    wfh = params["W_fh"].T                                            # (M, M)
    bfh = params["b_fh"].reshape(1, M)

    kernel = _make_tree_kernel(B, D, M, k_max)

    flops = int(T * (2 * B * (D + M) * 4 * M + k_max * 2 * B * M * M + 12 * B * M))
    transcendentals = int(T * B * M * (4 + k_max))
    bytes_accessed = int(4 * (x_sorted.size + wpack.size + bpack.size
                              + wfh.size + bfh.size + 2 * B * M
                              + child_pos.size + nchild.size + prob_tab.size))

    grid_spec = pltpu.PrefetchScalarGridSpec(
        num_scalar_prefetch=2,                                         # child_pos, nchild
        grid=(T,),
        in_specs=[
            pl.BlockSpec(memory_space=pltpu.MemorySpace.SMEM),         # prob_tab (T, k_max)
            pl.BlockSpec((1, B, D), lambda n, *_: (n, 0, 0)),          # x (per node)
            pl.BlockSpec((D + M, 4 * M), lambda n, *_: (0, 0)),        # wpack  (resident)
            pl.BlockSpec((1, 4 * M), lambda n, *_: (0, 0)),            # bpack  (resident)
            pl.BlockSpec((M, M), lambda n, *_: (0, 0)),                # wfh    (resident)
            pl.BlockSpec((1, M), lambda n, *_: (0, 0)),                # bfh    (resident)
        ],
        out_specs=(
            pl.BlockSpec((B, M), lambda n, *_: (0, 0)),                # root c
            pl.BlockSpec((B, M), lambda n, *_: (0, 0)),                # root h
        ),
        scratch_shapes=[
            pltpu.VMEM((T, B, M), jnp.float32),                        # c states (all nodes)
            pltpu.VMEM((T, B, M), jnp.float32),                        # h states (all nodes)
            pltpu.VMEM((B, M), jnp.float32),                           # child_h sum temp
            pltpu.VMEM((B, M), jnp.float32),                           # fc sum temp
        ],
    )

    c_root, h_root = pl.pallas_call(
        kernel,
        out_shape=(jax.ShapeDtypeStruct((B, M), jnp.float32),
                   jax.ShapeDtypeStruct((B, M), jnp.float32)),
        grid_spec=grid_spec,
        compiler_params=pltpu.CompilerParams(
            dimension_semantics=("arbitrary",)),                       # sequential dep chain
        cost_estimate=pl.CostEstimate(flops=flops,
                                      transcendentals=transcendentals,
                                      bytes_accessed=bytes_accessed),
    )(child_pos, nchild, prob_tab, x_sorted, wpack, bpack, wfh, bfh)

    # PyTorch node_forward returns (1, B, mem_dim) tensors
    return c_root[None, :, :], h_root[None, :, :]


# -------------------------- pure-JAX reference -----------------------------
def _node_forward_ref(x, child_c, child_h, p, M):
    # child_c / child_h are already weighted by prob, shape (K, B, M)
    ch_sum = jnp.sum(child_h, axis=0)
    iou = (x @ p["W_ioux"].T + p["b_ioux"]) + (ch_sum @ p["W_iouh"].T + p["b_iouh"])
    i = jax.nn.sigmoid(iou[:, 0 * M:1 * M])
    o = jax.nn.sigmoid(iou[:, 1 * M:2 * M])
    u = jnp.tanh(iou[:, 2 * M:3 * M])
    fx = x @ p["W_fx"].T + p["b_fx"]
    f = jax.nn.sigmoid(child_h @ p["W_fh"].T + p["b_fh"] + fx[None, :, :])
    fc = f * child_c
    c = i * u + jnp.sum(fc, axis=0)
    h = o * jnp.tanh(c)
    return c, h


def tree_forward_ref(root, inputs, prob, params, mem_dim):
    B = inputs.shape[1]

    def rec(node):
        states = [rec(ch) for ch in node.children]
        if node.num_children == 0:
            child_c = jnp.zeros((1, B, mem_dim), jnp.float32)
            child_h = jnp.zeros((1, B, mem_dim), jnp.float32)
        else:
            ws = [prob[node.idx, ch.idx] for ch in node.children]
            child_c = jnp.stack([w * s[0] for w, s in zip(ws, states)], axis=0)
            child_h = jnp.stack([w * s[1] for w, s in zip(ws, states)], axis=0)
        return _node_forward_ref(inputs[node.idx], child_c, child_h, params, mem_dim)

    c, h = rec(root)
    return c[None, :, :], h[None, :, :]


# --------------------------------- main -------------------------------------
if __name__ == "__main__":
    in_dim, mem_dim, B = 32, 32, 8
    K_MAX = 2
    M = mem_dim
    num_nodes = 7

    # tree: 0 -> (1, 2), 1 -> (3, 4), 2 -> (5, 6)
    n3, n4, n5, n6 = Node(3), Node(4), Node(5), Node(6)
    n1, n2 = Node(1, [n3, n4]), Node(2, [n5, n6])
    root = Node(0, [n1, n2])

    key = jax.random.PRNGKey(0)
    ks = jax.random.split(key, 10)

    def uinit(k, shape, fan_in):
        bound = 1.0 / np.sqrt(fan_in)
        return jax.random.uniform(k, shape, jnp.float32, -bound, bound)

    # nn.Linear parameters in PyTorch layout: W is (out_features, in_features)
    params = {
        "W_ioux": uinit(ks[0], (3 * M, in_dim), in_dim),
        "b_ioux": uinit(ks[1], (3 * M,), in_dim),
        "W_iouh": uinit(ks[2], (3 * M, M), M),
        "b_iouh": uinit(ks[3], (3 * M,), M),
        "W_fx":   uinit(ks[4], (M, in_dim), in_dim),
        "b_fx":   uinit(ks[5], (M,), in_dim),
        "W_fh":   uinit(ks[6], (M, M), M),
        "b_fh":   uinit(ks[7], (M,), M),
    }
    prob = jax.random.uniform(ks[8], (num_nodes, num_nodes), jnp.float32)
    inputs = jax.random.normal(ks[9], (num_nodes, B, in_dim), jnp.float32)

    # host-side flattening of the tree (structure only; no tensor data moves)
    node_order, child_pos, child_idx, nchild = build_topo_tables(root, K_MAX)
    node_order = jnp.asarray(node_order)
    child_pos = jnp.asarray(child_pos)
    child_idx = jnp.asarray(child_idx)
    nchild = jnp.asarray(nchild)

    # Pallas forward: single kernel launch for the whole tree
    c_pal, h_pal = tree_lstm_forward_pallas(
        inputs, prob, params, node_order, child_pos, child_idx, nchild)
    c_pal = jax.block_until_ready(c_pal)
    h_pal = jax.block_until_ready(h_pal)

    # pure-JAX recursive reference (mirrors the PyTorch module)
    c_ref, h_ref = tree_forward_ref(root, inputs, prob, params, M)

    assert c_pal.shape == (1, B, M) and h_pal.shape == (1, B, M)
    np.testing.assert_allclose(np.asarray(c_pal), np.asarray(c_ref),
                               rtol=1e-4, atol=1e-4)
    np.testing.assert_allclose(np.asarray(h_pal), np.asarray(h_ref),
                               rtol=1e-4, atol=1e-4)

    print("KERNEL_OK")
</pallas_src>

<mosaic_0001>
module attributes {stable_mosaic.version = 11 : i64} {
  func.func @kernel(%arg0: i32, %arg1: memref<7x2xi32, #tpu.memory_space<smem>>, %arg2: memref<7xi32, #tpu.memory_space<smem>>, %arg3: memref<7x2xf32, #tpu.memory_space<smem>>, %arg4: memref<1x8x32xf32, #tpu.memory_space<vmem>>, %arg5: memref<64x128xf32, #tpu.memory_space<vmem>>, %arg6: memref<1x128xf32, #tpu.memory_space<vmem>>, %arg7: memref<32x32xf32, #tpu.memory_space<vmem>>, %arg8: memref<1x32xf32, #tpu.memory_space<vmem>>, %arg9: memref<8x32xf32, #tpu.memory_space<vmem>>, %arg10: memref<8x32xf32, #tpu.memory_space<vmem>>, %arg11: memref<7x8x32xf32, #tpu.memory_space<vmem>>, %arg12: memref<7x8x32xf32, #tpu.memory_space<vmem>>, %arg13: memref<8x32xf32, #tpu.memory_space<vmem>>, %arg14: memref<8x32xf32, #tpu.memory_space<vmem>>) attributes {dimension_semantics = [#tpu.dimension_semantics<arbitrary>], iteration_bounds = array<i64: 7>, scalar_prefetch = 2 : i64, scratch_operands = 4 : i64, tpu.core_type = #tpu.core_type<tc>, window_params = [{transform_indices = @transform_0, window_bounds = array<i64: 7, 2>}, {transform_indices = @transform_1, window_bounds = array<i64: 1, 8, 32>}, {pipeline_mode = #tpu.pipeline_mode<synchronous>, transform_indices = @transform_2, window_bounds = array<i64: 64, 128>}, {pipeline_mode = #tpu.pipeline_mode<synchronous>, transform_indices = @transform_3, window_bounds = array<i64: 1, 128>}, {pipeline_mode = #tpu.pipeline_mode<synchronous>, transform_indices = @transform_4, window_bounds = array<i64: 32, 32>}, {pipeline_mode = #tpu.pipeline_mode<synchronous>, transform_indices = @transform_5, window_bounds = array<i64: 1, 32>}, {pipeline_mode = #tpu.pipeline_mode<synchronous>, transform_indices = @transform_6, window_bounds = array<i64: 8, 32>}, {pipeline_mode = #tpu.pipeline_mode<synchronous>, transform_indices = @transform_7, window_bounds = array<i64: 8, 32>}]} {
    %c0_i32 = arith.constant 0 : i32
    %0 = arith.cmpi eq, %arg0, %c0_i32 : i32
    %1 = arith.extui %0 : i1 to i32
    %c0_i32_0 = arith.constant 0 : i32
    %2 = arith.cmpi ne, %1, %c0_i32_0 : i32
    scf.if %2 {
      %cst_28 = arith.constant 0.000000e+00 : f32
      %55 = vector.broadcast %cst_28 : f32 to vector<7x8x32xf32>
      %c0_29 = arith.constant 0 : index
      %c0_30 = arith.constant 0 : index
      %c0_31 = arith.constant 0 : index
      %56 = vector.load %arg11[%c0_29, %c0_30, %c0_31] : memref<7x8x32xf32, #tpu.memory_space<vmem>>, vector<7x8x32xf32>
      tpu.vector_store %arg11[%c0_29, %c0_30, %c0_31], %55 {strides = array<i32>} : memref<7x8x32xf32, #tpu.memory_space<vmem>>, vector<7x8x32xf32>,
      %cst_32 = arith.constant 0.000000e+00 : f32
      %57 = vector.broadcast %cst_32 : f32 to vector<7x8x32xf32>
      %c0_33 = arith.constant 0 : index
      %c0_34 = arith.constant 0 : index
      %c0_35 = arith.constant 0 : index
      %58 = vector.load %arg12[%c0_33, %c0_34, %c0_35] : memref<7x8x32xf32, #tpu.memory_space<vmem>>, vector<7x8x32xf32>
      tpu.vector_store %arg12[%c0_33, %c0_34, %c0_35], %57 {strides = array<i32>} : memref<7x8x32xf32, #tpu.memory_space<vmem>>, vector<7x8x32xf32>,
    } else {
    }
    %3 = arith.index_cast %arg0 : i32 to index
    %4 = memref.load %arg2[%3] : memref<7xi32, #tpu.memory_space<smem>>
    %c0 = arith.constant 0 : index
    %c0_1 = arith.constant 0 : index
    %c0_2 = arith.constant 0 : index
    %5 = vector.load %arg4[%c0, %c0_1, %c0_2] : memref<1x8x32xf32, #tpu.memory_space<vmem>>, vector<1x8x32xf32>
    %6 = vector.shape_cast %5 : vector<1x8x32xf32> to vector<8x32xf32>
    %cst = arith.constant 0.000000e+00 : f32
    %7 = vector.broadcast %cst : f32 to vector<8x32xf32>
    %c0_3 = arith.constant 0 : index
    %c0_4 = arith.constant 0 : index
    %8 = vector.load %arg13[%c0_3, %c0_4] : memref<8x32xf32, #tpu.memory_space<vmem>>, vector<8x32xf32>
    tpu.vector_store %arg13[%c0_3, %c0_4], %7 {strides = array<i32>} : memref<8x32xf32, #tpu.memory_space<vmem>>, vector<8x32xf32>,
    %c0_i32_5 = arith.constant 0 : i32
    %9 = arith.cmpi sgt, %4, %c0_i32_5 : i32
    %10 = arith.extui %9 : i1 to i32
    %c0_i32_6 = arith.constant 0 : i32
    %11 = arith.cmpi ne, %10, %c0_i32_6 : i32
    scf.if %11 {
      %cst_28 = arith.constant 0.000000e+00 : f32
      %55 = vector.broadcast %cst_28 : f32 to vector<8x32xf32>
      %56 = arith.index_cast %arg0 : i32 to index
      %c0_29 = arith.constant 0 : index
      %57 = memref.load %arg1[%56, %c0_29] : memref<7x2xi32, #tpu.memory_space<smem>>
      %58 = arith.index_cast %arg0 : i32 to index
      %c0_30 = arith.constant 0 : index
      %59 = memref.load %arg3[%58, %c0_30] : memref<7x2xf32, #tpu.memory_space<smem>>
      %60 = arith.index_cast %57 : i32 to index
      %c0_31 = arith.constant 0 : index
      %c0_32 = arith.constant 0 : index
      %61 = vector.load %arg12[%60, %c0_31, %c0_32] : memref<7x8x32xf32, #tpu.memory_space<vmem>>, vector<1x8x32xf32>
      %62 = vector.shape_cast %61 : vector<1x8x32xf32> to vector<8x32xf32>
      %63 = vector.broadcast %59 : f32 to vector<8x32xf32>
      %64 = arith.mulf %62, %63 : vector<8x32xf32>
      %65 = arith.addf %55, %64 : vector<8x32xf32>
      %66 = arith.index_cast %arg0 : i32 to index
      %c1 = arith.constant 1 : index
      %67 = memref.load %arg1[%66, %c1] : memref<7x2xi32, #tpu.memory_space<smem>>
      %68 = arith.index_cast %arg0 : i32 to index
      %c1_33 = arith.constant 1 : index
      %69 = memref.load %arg3[%68, %c1_33] : memref<7x2xf32, #tpu.memory_space<smem>>
      %70 = arith.index_cast %67 : i32 to index
      %c0_34 = arith.constant 0 : index
      %c0_35 = arith.constant 0 : index
      %71 = vector.load %arg12[%70, %c0_34, %c0_35] : memref<7x8x32xf32, #tpu.memory_space<vmem>>, vector<1x8x32xf32>
      %72 = vector.shape_cast %71 : vector<1x8x32xf32> to vector<8x32xf32>
      %73 = vector.broadcast %69 : f32 to vector<8x32xf32>
      %74 = arith.mulf %72, %73 : vector<8x32xf32>
      %75 = arith.addf %65, %74 : vector<8x32xf32>
      %c0_36 = arith.constant 0 : index
      %c0_37 = arith.constant 0 : index
      %76 = vector.load %arg13[%c0_36, %c0_37] : memref<8x32xf32, #tpu.memory_space<vmem>>, vector<8x32xf32>
      tpu.vector_store %arg13[%c0_36, %c0_37], %75 {strides = array<i32>} : memref<8x32xf32, #tpu.memory_space<vmem>>, vector<8x32xf32>,
    } else {
    }
    %c0_7 = arith.constant 0 : index
    %c0_8 = arith.constant 0 : index
    %12 = vector.load %arg13[%c0_7, %c0_8] : memref<8x32xf32, #tpu.memory_space<vmem>>, vector<8x32xf32>
    %13 = tpu.concatenate %6, %12 in 1 : vector<8x32xf32>, vector<8x32xf32> -> vector<8x64xf32>
    %c0_9 = arith.constant 0 : index
    %c0_10 = arith.constant 0 : index
    %14 = vector.load %arg5[%c0_9, %c0_10] : memref<64x128xf32, #tpu.memory_space<vmem>>, vector<64x128xf32>
    %cst_11 = arith.constant dense<0.000000e+00> : vector<8x128xf32>
    %15 = tpu.matmul %13, %14, %cst_11 {dimension_numbers = #tpu.dot_dimension_numbers<[1], [0], [0], [1], [0, 0, 1, 1], [], []>} : vector<8x64xf32>, vector<64x128xf32>, vector<8x128xf32> -> vector<8x128xf32>
    %c0_12 = arith.constant 0 : index
    %c0_13 = arith.constant 0 : index
    %16 = vector.load %arg6[%c0_12, %c0_13] : memref<1x128xf32, #tpu.memory_space<vmem>>, vector<1x128xf32>
    %17 = vector.broadcast %16 : vector<1x128xf32> to vector<8x128xf32>
    %18 = arith.addf %15, %17 : vector<8x128xf32>
    %19 = vector.extract_strided_slice %18 {offsets = [0, 0], sizes = [8, 32], strides = [1, 1]} : vector<8x128xf32> to vector<8x32xf32>
    %20 = arith.negf %19 : vector<8x32xf32>
    %21 = math.exp %20 : vector<8x32xf32>
    %cst_14 = arith.constant 1.000000e+00 : f32
    %22 = vector.broadcast %cst_14 : f32 to vector<8x32xf32>
    %23 = arith.addf %22, %21 : vector<8x32xf32>
    %24 = arith.divf %22, %23 : vector<8x32xf32>
    %25 = vector.extract_strided_slice %18 {offsets = [0, 32], sizes = [8, 32], strides = [1, 1]} : vector<8x128xf32> to vector<8x32xf32>
    %26 = arith.negf %25 : vector<8x32xf32>
    %27 = math.exp %26 : vector<8x32xf32>
    %cst_15 = arith.constant 1.000000e+00 : f32
    %28 = vector.broadcast %cst_15 : f32 to vector<8x32xf32>
    %29 = arith.addf %28, %27 : vector<8x32xf32>
    %30 = arith.divf %28, %29 : vector<8x32xf32>
    %31 = vector.extract_strided_slice %18 {offsets = [0, 64], sizes = [8, 32], strides = [1, 1]} : vector<8x128xf32> to vector<8x32xf32>
    %32 = math.tanh %31 : vector<8x32xf32>
    %33 = vector.extract_strided_slice %18 {offsets = [0, 96], sizes = [8, 32], strides = [1, 1]} : vector<8x128xf32> to vector<8x32xf32>
    %cst_16 = arith.constant 0.000000e+00 : f32
    %34 = vector.broadcast %cst_16 : f32 to vector<8x32xf32>
    %c0_17 = arith.constant 0 : index
    %c0_18 = arith.constant 0 : index
    %35 = vector.load %arg14[%c0_17, %c0_18] : memref<8x32xf32, #tpu.memory_space<vmem>>, vector<8x32xf32>
    tpu.vector_store %arg14[%c0_17, %c0_18], %34 {strides = array<i32>} : memref<8x32xf32, #tpu.memory_space<vmem>>, vector<8x32xf32>,
    %c0_i32_19 = arith.constant 0 : i32
    %36 = arith.cmpi sgt, %4, %c0_i32_19 : i32
    %37 = arith.extui %36 : i1 to i32
    %c0_i32_20 = arith.constant 0 : i32
    %38 = arith.cmpi ne, %37, %c0_i32_20 : i32
    scf.if %38 {
      %cst_28 = arith.constant 0.000000e+00 : f32
      %55 = vector.broadcast %cst_28 : f32 to vector<8x32xf32>
      %56 = arith.index_cast %arg0 : i32 to index
      %c0_29 = arith.constant 0 : index
      %57 = memref.load %arg1[%56, %c0_29] : memref<7x2xi32, #tpu.memory_space<smem>>
      %58 = arith.index_cast %arg0 : i32 to index
      %c0_30 = arith.constant 0 : index
      %59 = memref.load %arg3[%58, %c0_30] : memref<7x2xf32, #tpu.memory_space<smem>>
      %60 = arith.index_cast %57 : i32 to index
      %c0_31 = arith.constant 0 : index
      %c0_32 = arith.constant 0 : index
      %61 = vector.load %arg12[%60, %c0_31, %c0_32] : memref<7x8x32xf32, #tpu.memory_space<vmem>>, vector<1x8x32xf32>
      %62 = vector.shape_cast %61 : vector<1x8x32xf32> to vector<8x32xf32>
      %63 = vector.broadcast %59 : f32 to vector<8x32xf32>
      %64 = arith.mulf %62, %63 : vector<8x32xf32>
      %65 = arith.index_cast %57 : i32 to index
      %c0_33 = arith.constant 0 : index
      %c0_34 = arith.constant 0 : index
      %66 = vector.load %arg11[%65, %c0_33, %c0_34] : memref<7x8x32xf32, #tpu.memory_space<vmem>>, vector<1x8x32xf32>
      %67 = vector.shape_cast %66 : vector<1x8x32xf32> to vector<8x32xf32>
      %68 = vector.broadcast %59 : f32 to vector<8x32xf32>
      %69 = arith.mulf %67, %68 : vector<8x32xf32>
      %c0_35 = arith.constant 0 : index
      %c0_36 = arith.constant 0 : index
      %70 = vector.load %arg7[%c0_35, %c0_36] : memref<32x32xf32, #tpu.memory_space<vmem>>, vector<32x32xf32>
      %cst_37 = arith.constant dense<0.000000e+00> : vector<8x32xf32>
      %71 = tpu.matmul %64, %70, %cst_37 {dimension_numbers = #tpu.dot_dimension_numbers<[1], [0], [0], [1], [0, 0, 1, 1], [], []>} : vector<8x32xf32>, vector<32x32xf32>, vector<8x32xf32> -> vector<8x32xf32>
      %c0_38 = arith.constant 0 : index
      %c0_39 = arith.constant 0 : index
      %72 = vector.load %arg8[%c0_38, %c0_39] : memref<1x32xf32, #tpu.memory_space<vmem>>, vector<1x32xf32>
      %73 = vector.broadcast %72 : vector<1x32xf32> to vector<8x32xf32>
      %74 = arith.addf %71, %73 : vector<8x32xf32>
      %75 = arith.addf %74, %33 : vector<8x32xf32>
      %76 = arith.negf %75 : vector<8x32xf32>
      %77 = math.exp %76 : vector<8x32xf32>
      %cst_40 = arith.constant 1.000000e+00 : f32
      %78 = vector.broadcast %cst_40 : f32 to vector<8x32xf32>
      %79 = arith.addf %78, %77 : vector<8x32xf32>
      %80 = arith.divf %78, %79 : vector<8x32xf32>
      %81 = arith.mulf %80, %69 : vector<8x32xf32>
      %82 = arith.addf %55, %81 : vector<8x32xf32>
      %83 = arith.index_cast %arg0 : i32 to index
      %c1 = arith.constant 1 : index
      %84 = memref.load %arg1[%83, %c1] : memref<7x2xi32, #tpu.memory_space<smem>>
      %85 = arith.index_cast %arg0 : i32 to index
      %c1_41 = arith.constant 1 : index
      %86 = memref.load %arg3[%85, %c1_41] : memref<7x2xf32, #tpu.memory_space<smem>>
      %87 = arith.index_cast %84 : i32 to index
      %c0_42 = arith.constant 0 : index
      %c0_43 = arith.constant 0 : index
      %88 = vector.load %arg12[%87, %c0_42, %c0_43] : memref<7x8x32xf32, #tpu.memory_space<vmem>>, vector<1x8x32xf32>
      %89 = vector.shape_cast %88 : vector<1x8x32xf32> to vector<8x32xf32>
      %90 = vector.broadcast %86 : f32 to vector<8x32xf32>
      %91 = arith.mulf %89, %90 : vector<8x32xf32>
      %92 = arith.index_cast %84 : i32 to index
      %c0_44 = arith.constant 0 : index
      %c0_45 = arith.constant 0 : index
      %93 = vector.load %arg11[%92, %c0_44, %c0_45] : memref<7x8x32xf32, #tpu.memory_space<vmem>>, vector<1x8x32xf32>
      %94 = vector.shape_cast %93 : vector<1x8x32xf32> to vector<8x32xf32>
      %95 = vector.broadcast %86 : f32 to vector<8x32xf32>
      %96 = arith.mulf %94, %95 : vector<8x32xf32>
      %c0_46 = arith.constant 0 : index
      %c0_47 = arith.constant 0 : index
      %97 = vector.load %arg7[%c0_46, %c0_47] : memref<32x32xf32, #tpu.memory_space<vmem>>, vector<32x32xf32>
      %cst_48 = arith.constant dense<0.000000e+00> : vector<8x32xf32>
      %98 = tpu.matmul %91, %97, %cst_48 {dimension_numbers = #tpu.dot_dimension_numbers<[1], [0], [0], [1], [0, 0, 1, 1], [], []>} : vector<8x32xf32>, vector<32x32xf32>, vector<8x32xf32> -> vector<8x32xf32>
      %c0_49 = arith.constant 0 : index
      %c0_50 = arith.constant 0 : index
      %99 = vector.load %arg8[%c0_49, %c0_50] : memref<1x32xf32, #tpu.memory_space<vmem>>, vector<1x32xf32>
      %100 = vector.broadcast %99 : vector<1x32xf32> to vector<8x32xf32>
      %101 = arith.addf %98, %100 : vector<8x32xf32>
      %102 = arith.addf %101, %33 : vector<8x32xf32>
      %103 = arith.negf %102 : vector<8x32xf32>
      %104 = math.exp %103 : vector<8x32xf32>
      %cst_51 = arith.constant 1.000000e+00 : f32
      %105 = vector.broadcast %cst_51 : f32 to vector<8x32xf32>
      %106 = arith.addf %105, %104 : vector<8x32xf32>
      %107 = arith.divf %105, %106 : vector<8x32xf32>
      %108 = arith.mulf %107, %96 : vector<8x32xf32>
      %109 = arith.addf %82, %108 : vector<8x32xf32>
      %c0_52 = arith.constant 0 : index
      %c0_53 = arith.constant 0 : index
      %110 = vector.load %arg14[%c0_52, %c0_53] : memref<8x32xf32, #tpu.memory_space<vmem>>, vector<8x32xf32>
      tpu.vector_store %arg14[%c0_52, %c0_53], %109 {strides = array<i32>} : memref<8x32xf32, #tpu.memory_space<vmem>>, vector<8x32xf32>,
    } else {
    }
    %39 = arith.mulf %24, %32 : vector<8x32xf32>
    %c0_21 = arith.constant 0 : index
    %c0_22 = arith.constant 0 : index
    %40 = vector.load %arg14[%c0_21, %c0_22] : memref<8x32xf32, #tpu.memory_space<vmem>>, vector<8x32xf32>
    %41 = arith.addf %39, %40 : vector<8x32xf32>
    %42 = math.tanh %41 : vector<8x32xf32>
    %43 = arith.mulf %30, %42 : vector<8x32xf32>
    %44 = arith.index_cast %arg0 : i32 to index
    %c0_23 = arith.constant 0 : index
    %c0_24 = arith.constant 0 : index
    %45 = vector.load %arg11[%44, %c0_23, %c0_24] : memref<7x8x32xf32, #tpu.memory_space<vmem>>, vector<1x8x32xf32>
    %46 = vector.shape_cast %45 : vector<1x8x32xf32> to vector<8x32xf32>
    %47 = vector.shape_cast %41 : vector<8x32xf32> to vector<1x8x32xf32>
    tpu.vector_store %arg11[%44, %c0_23, %c0_24], %47 {strides = array<i32>} : memref<7x8x32xf32, #tpu.memory_space<vmem>>, vector<1x8x32xf32>,
    %48 = arith.index_cast %arg0 : i32 to index
    %c0_25 = arith.constant 0 : index
    %c0_26 = arith.constant 0 : index
    %49 = vector.load %arg12[%48, %c0_25, %c0_26] : memref<7x8x32xf32, #tpu.memory_space<vmem>>, vector<1x8x32xf32>
    %50 = vector.shape_cast %49 : vector<1x8x32xf32> to vector<8x32xf32>
    %51 = vector.shape_cast %43 : vector<8x32xf32> to vector<1x8x32xf32>
    tpu.vector_store %arg12[%48, %c0_25, %c0_26], %51 {strides = array<i32>} : memref<7x8x32xf32, #tpu.memory_space<vmem>>, vector<1x8x32xf32>,
    %c6_i32 = arith.constant 6 : i32
    %52 = arith.cmpi eq, %arg0, %c6_i32 : i32
    %53 = arith.extui %52 : i1 to i32
    %c0_i32_27 = arith.constant 0 : i32
    %54 = arith.cmpi ne, %53, %c0_i32_27 : i32
    scf.if %54 {
      %c0_28 = arith.constant 0 : index
      %c0_29 = arith.constant 0 : index
      %55 = vector.load %arg9[%c0_28, %c0_29] : memref<8x32xf32, #tpu.memory_space<vmem>>, vector<8x32xf32>
      tpu.vector_store %arg9[%c0_28, %c0_29], %41 {strides = array<i32>} : memref<8x32xf32, #tpu.memory_space<vmem>>, vector<8x32xf32>,
      %c0_30 = arith.constant 0 : index
      %c0_31 = arith.constant 0 : index
      %56 = vector.load %arg10[%c0_30, %c0_31] : memref<8x32xf32, #tpu.memory_space<vmem>>, vector<8x32xf32>
      tpu.vector_store %arg10[%c0_30, %c0_31], %43 {strides = array<i32>} : memref<8x32xf32, #tpu.memory_space<vmem>>, vector<8x32xf32>,
    } else {
    }
    return
  }
  func.func @transform_0(%arg0: i32, %arg1: memref<7x2xi32, #tpu.memory_space<smem>>, %arg2: memref<7xi32, #tpu.memory_space<smem>>) -> (i32, i32) {
    %c0_i32 = arith.constant 0 : i32
    %c0_i32_0 = arith.constant 0 : i32
    %c0_i32_1 = arith.constant 0 : i32
    return %c0_i32, %c0_i32_0 : i32, i32
  }
  func.func @transform_1(%arg0: i32, %arg1: memref<7x2xi32, #tpu.memory_space<smem>>, %arg2: memref<7xi32, #tpu.memory_space<smem>>) -> (i32, i32, i32) {
    %c0_i32 = arith.constant 0 : i32
    %c0_i32_0 = arith.constant 0 : i32
    %c0_i32_1 = arith.constant 0 : i32
    return %arg0, %c0_i32, %c0_i32_0 : i32, i32, i32
  }
  func.func @transform_2(%arg0: i32, %arg1: memref<7x2xi32, #tpu.memory_space<smem>>, %arg2: memref<7xi32, #tpu.memory_space<smem>>) -> (i32, i32) {
    %c0_i32 = arith.constant 0 : i32
    %c0_i32_0 = arith.constant 0 : i32
    %c0_i32_1 = arith.constant 0 : i32
    return %c0_i32, %c0_i32_0 : i32, i32
  }
  func.func @transform_3(%arg0: i32, %arg1: memref<7x2xi32, #tpu.memory_space<smem>>, %arg2: memref<7xi32, #tpu.memory_space<smem>>) -> (i32, i32) {
    %c0_i32 = arith.constant 0 : i32
    %c0_i32_0 = arith.constant 0 : i32
    %c0_i32_1 = arith.constant 0 : i32
    return %c0_i32, %c0_i32_0 : i32, i32
  }
  func.func @transform_4(%arg0: i32, %arg1: memref<7x2xi32, #tpu.memory_space<smem>>, %arg2: memref<7xi32, #tpu.memory_space<smem>>) -> (i32, i32) {
    %c0_i32 = arith.constant 0 : i32
    %c0_i32_0 = arith.constant 0 : i32
    %c0_i32_1 = arith.constant 0 : i32
    return %c0_i32, %c0_i32_0 : i32, i32
  }
  func.func @transform_5(%arg0: i32, %arg1: memref<7x2xi32, #tpu.memory_space<smem>>, %arg2: memref<7xi32, #tpu.memory_space<smem>>) -> (i32, i32) {
    %c0_i32 = arith.constant 0 : i32
    %c0_i32_0 = arith.constant 0 : i32
    %c0_i32_1 = arith.constant 0 : i32
    return %c0_i32, %c0_i32_0 : i32, i32
  }
  func.func @transform_6(%arg0: i32, %arg1: memref<7x2xi32, #tpu.memory_space<smem>>, %arg2: memref<7xi32, #tpu.memory_space<smem>>) -> (i32, i32) {
    %c0_i32 = arith.constant 0 : i32
    %c0_i32_0 = arith.constant 0 : i32
    %c0_i32_1 = arith.constant 0 : i32
    return %c0_i32, %c0_i32_0 : i32, i32
  }
  func.func @transform_7(%arg0: i32, %arg1: memref<7x2xi32, #tpu.memory_space<smem>>, %arg2: memref<7xi32, #tpu.memory_space<smem>>) -> (i32, i32) {
    %c0_i32 = arith.constant 0 : i32
    %c0_i32_0 = arith.constant 0 : i32
    %c0_i32_1 = arith.constant 0 : i32
    return %c0_i32, %c0_i32_0 : i32, i32
  }
}

</mosaic_0001>

<bundles_post_ra>
// kernel: tree_lstm_forward_pallas.1
= control target key start
LH: loop header
LB: loop body
LE: loop exit
PB: predicated region body
PF: predicated region fallthrough
CT: control target
= control target key end

     0   :  { %s1286_s0 = inlined_call_operand.vmem [shape: s32[7,2], index: 0, kind: input, shape index: {}]   ;;  %s1287_s2 = inlined_call_operand.vmem [shape: f32[7,2], index: 2, kind: input, shape index: {}]   ;;  %s1288_s3 = inlined_call_operand.vmem [shape: f32[7,8,32], index: 3, kind: input, shape index: {}]   ;;  %s1289_s4 = inlined_call_operand.vmem [shape: f32[64,128], index: 4, kind: input, shape index: {}]   ;;  %s1290_s5 = inlined_call_operand.vmem [shape: f32[1,128], index: 5, kind: input, shape index: {}]   ;;  %s1291_s6 = inlined_call_operand.vmem [shape: f32[32,32], index: 6, kind: input, shape index: {}]   ;;  %s1292_s7 = inlined_call_operand.vmem [shape: f32[1,32], index: 7, kind: input, shape index: {}]   ;;  %s1293_s8 = inlined_call_operand.hbm [shape: f32[8,32], index: 8, kind: output, shape index: {0}]   ;;  %s1294_s9 = inlined_call_operand.hbm [shape: f32[8,32], index: 9, kind: output, shape index: {1}]   ;;  %s1295_s1 = inlined_call_operand.vmem [shape: s32[7], index: 1, kind: input, shape index: {}]  }
   0x1   :  { %s15_s11 = sshll.u32 %s1286_s0, 4  ;;  %s19_s14 = sshll.u32 %s1295_s1, 4  ;;  %s16_s11 = int_to_ptr.vmem [resolvable:$true] %s15_s11  ;;  %s20_s14 = int_to_ptr.vmem [resolvable:$true] %s19_s14 }
   0x2   :  { %s943_s15 = scalar_lea.vmem %s16_s11, 128  ;;  %p948_p1 = scmp.lt.s32.totalorder %s16_s11, %s16_s11 }
   0x3   :  { %p944_p0 = scmp.ne.s32.totalorder %s16_s11, %s943_s15  ;;  %p949_p2 = scmp.lt.s32.totalorder %s943_s15, %s943_s15 }
   0x5   :  { %p950_p3 = por %p949_p2, %p948_p1 }
   0x7   :  { %p951_p4 = pnand %p950_p3, %p944_p0 }
   0x9   :  { %954 = shalt.err (!%p951_p4)  }
   0xa   :  { %s1056_s16 = smov [#allocation7]   ;;  %s955_s17 = scalar_lea.vmem %s20_s14, 16 }
   0xb   :  { %18 = dma.vmem_to_smem %s16_s11, 128, %s1056_s16, [#allocation6] }
   0xc   :  { %p956_p5 = scmp.ne.s32.totalorder %s20_s14, %s955_s17  ;;  %p960_p6 = scmp.lt.s32.totalorder %s20_s14, %s20_s14 }
   0xd   :  { %p961_p7 = scmp.lt.s32.totalorder %s955_s17, %s955_s17 }
   0xf   :  { %p962_p8 = por %p961_p7, %p960_p6 }
  0x11   :  { %p963_p9 = pnand %p962_p8, %p956_p5 }
  0x13   :  { %966 = shalt.err (!%p963_p9)  }
  0x14   :  { %s1057_s0 = smov [#allocation8]  }
  0x15   :  { %22 = dma.vmem_to_smem %s20_s14, 16, %s1057_s0, [#allocation6] }
  0x16   :  { %1038 = dma.done.wait [#allocation6], 144 }
  0x17   :  { %1039 = vsyncadd [#allocation6], 4294967152 }
  0x18   :  { %24 = sfence }
  0x19   :  { %25 = vsyncpa [#allocation11], 0 }
  0x1a   :  { %26 = vsyncpa [#allocation10], 0 }
  0x1b   :  { %27 = vsyncpa [#allocation14], 0  ;;  %s1128_s1 = smov 0  }
  0x1c LB: > { %s1134_s18 = sadd.s32 4294967295, %s1054_s1   ;;  %p766_p10 = scmp.ge.s32.totalorder %s1054_s1, 1  ;;  %s1054_s1 = sphi %s1128_s1, %s33_s1  }
  0x1d   : > { %p211_p11 = scmp.lt.s32.totalorder %s1054_s1, 8  ;;  %s224_s21 = sshll.u32 %s1287_s2, 4  ;;  %s225_s21 = int_to_ptr.vmem [resolvable:$true] %s224_s21 }
  0x1e   : > { %p897_p0 = scmp.eq.s32.totalorder %s1134_s18, 0  ;;  %s967_s23 = scalar_lea.vmem %s225_s21, 128 }
  0x1f   : > { %p1142_p13 = pnand %p766_p10, %p211_p11  ;;  %p968_p3 = scmp.ne.s32.totalorder %s225_s21, %s967_s23 }
  0x20   : > { %p975_p7 = scmp.lt.s32.totalorder %s225_s21, %s225_s21  ;;  %p976_p8 = scmp.lt.s32.totalorder %s967_s23, %s967_s23 }
  0x21   : > { %p893_p1 = pneg %p1142_p13 }
  0x22   : > { %p977_p9 = por %p976_p8, %p975_p7 }
  0x23   : > { %p894_p2 = pnand %p897_p0, %p893_p1 }
  0x25   : > { %p969_p4 = pneg %p894_p2 }
  0x27   : > { %p970_p5 = pnand %p969_p4, %p968_p3 }
  0x29   : > { %p971_p6 = pneg %p970_p5 }
  0x2b   : > { %p978_p12 = pnand %p977_p9, %p971_p6 }
  0x2d   : > { %981 = shalt.err (!%p978_p12)
}
  0x2e   : > { %s1058_s24 = smov [#allocation9]   ;;  %256 = sbr.rel (%p1142_p13) target bundleno = 1085 (0x43d), region = 44 }
  0x2f   : > { %896 = dma.vmem_to_smem (!%p894_p2), %s225_s21, 128, %s1058_s24, [#allocation11]  }
  0x35   : > { %1041 = dma.done.wait (%p897_p0), [#allocation11], 128  }
  0x36   : > { %1043 = vsyncadd (%p897_p0), [#allocation11], 4294967168 }
  0x37   : > { %262 = sfence }
  0x38   : > { %p283_p10 = scmp.lt.s32.totalorder %s1134_s18, 6  ;;  %p1297_p11 = scmp.ne.s32.totalorder %s1134_s18, 0 }
  0x39   : > { %vm291_vm0 = vcmask (!%p1297_p11), 261120   ;;  %v1059_v0 = vmov (!%p1297_p11), 0.0  }
  0x3a   : > { %s284_s25 = scalar_select %p283_p10, %s1134_s18, 6 }
  0x3b   : > { %290 = sbr.rel (%p1297_p11) target bundleno = 66 (0x42), region = 52  ;;  %292 = vst.msk [vmem:[#allocation2] sm:$0xff] (!%p1297_p11), %vm291_vm0, %v1059_v0  ;;  %293 = vst.msk [vmem:[#allocation2 + $0x8] sm:$0xff] (!%p1297_p11), %vm291_vm0, %v1059_v0 }
  0x3c   : > { %s771_s26 = sshll.u32 %s284_s25, 3  ;;  %294 = vst.msk [vmem:[#allocation2 + $0x10] sm:$0xff] (!%p1297_p11), %vm291_vm0, %v1059_v0  ;;  %295 = vst.msk [vmem:[#allocation2 + $0x18] sm:$0xff] (!%p1297_p11), %vm291_vm0, %v1059_v0 }
  0x3d   : > { %s286_s29 = scalar_lea.vmem %s1288_s3, %s771_s26  ;;  %296 = vst.msk [vmem:[#allocation2 + $0x20] sm:$0xff] (!%p1297_p11), %vm291_vm0, %v1059_v0  ;;  %297 = vst.msk [vmem:[#allocation2 + $0x28] sm:$0xff] (!%p1297_p11), %vm291_vm0, %v1059_v0 }
  0x3e   : > { %298 = vst.msk [vmem:[#allocation2 + $0x30] sm:$0xff] (!%p1297_p11), %vm291_vm0, %v1059_v0  ;;  %299 = vst.msk [vmem:[#allocation3] sm:$0xff] (!%p1297_p11), %vm291_vm0, %v1059_v0 }
  0x3f   : > { %300 = vst.msk [vmem:[#allocation3 + $0x8] sm:$0xff] (!%p1297_p11), %vm291_vm0, %v1059_v0  ;;  %301 = vst.msk [vmem:[#allocation3 + $0x10] sm:$0xff] (!%p1297_p11), %vm291_vm0, %v1059_v0 }
  0x40   : > { %302 = vst.msk [vmem:[#allocation3 + $0x18] sm:$0xff] (!%p1297_p11), %vm291_vm0, %v1059_v0  ;;  %303 = vst.msk [vmem:[#allocation3 + $0x20] sm:$0xff] (!%p1297_p11), %vm291_vm0, %v1059_v0 }
  0x41   : > { %304 = vst.msk [vmem:[#allocation3 + $0x28] sm:$0xff] (!%p1297_p11), %vm291_vm0, %v1059_v0  ;;  %305 = vst.msk [vmem:[#allocation3 + $0x30] sm:$0xff] (!%p1297_p11), %vm291_vm0, %v1059_v0 }
  0x42 PF: > { %s1165_s30 = sld [smem:[#allocation8 + %s1134_s18]]  ;;  %v307_v1 = vld [vmem:[%s286_s29] sm:$0xff]  ;;  %vm308_vm1 = vcmask 261120   ;;  %v1060_v2 = vmov 0.0  }
  0x43   : > { %309 = vst.msk [vmem:[#allocation4] sm:$0xff] %vm308_vm1, %v1060_v2 }
  0x48   : > { %p773_p12 = scmp.le.s32.totalorder %s1165_s30, 0 }
  0x49   : > { %s774_s10 = sshll.u32 (!%p773_p12), %s1134_s18, 7 }
  0x4a   : > { %313 = sbr.rel (%p773_p12) target bundleno = 90 (0x5a), region = 56  ;;  %s315_s11 = sld [smem:[#allocation7 + %s774_s10]] (!%p773_p12) }
  0x4b   : > { %s316_s12 = sld [smem:[#allocation9 + %s774_s10]] (!%p773_p12)  ;;  %s323_s13 = sadd.s32 (!%p773_p12), 1, %s774_s10 }
  0x4c   : > { %s324_s14 = sld [smem:[#allocation7 + %s323_s13]] (!%p773_p12) }
  0x4d   : > { %s325_s15 = sld [smem:[#allocation9 + %s323_s13]] (!%p773_p12) }
  0x50   : > { %s775_s16 = sshll.u32 (!%p773_p12), %s315_s11, 3 }
  0x51   : > { %v320_v3 = vstv %s316_s12  ;;  %s318_s17 = scalar_lea.vmem [#allocation3], %s775_s16 }
  0x52   : > { %v319_v4 = vld [vmem:[%s318_s17] sm:$0xff]  ;;  %s776_s0 = sshll.u32 %s324_s14, 3 }
  0x53   : > { %v329_v5 = vstv %s325_s15  ;;  %v321_v6 = vmul.f32 %v320_v3, %v319_v4  ;;  %s327_s19 = scalar_lea.vmem [#allocation3], %s776_s0 }
  0x54   : > { %v328_v7 = vld [vmem:[%s327_s19] sm:$0xff] }
  0x55   : > { %v330_v8 = vmul.f32 %v329_v5, %v328_v7 }
  0x57   : > { %v331_v9 = vadd.f32 %v330_v8, %v321_v6 }
  0x59   : > { %332 = vst.msk [vmem:[#allocation4] sm:$0xff] %vm308_vm1, %v331_v9 }
  0x5a PF: > { %v339_v11 = vld [vmem:[%s1289_s4] sm:$0xff]  ;;  %v340_v12 = vld [vmem:[%s1289_s4 + $0x8] sm:$0xff]  ;;  %435 = vst.msk [vmem:[#allocation5] sm:$0xff] %vm308_vm1, %v1060_v2  ;;  %s1061_s24 = smov 32   ;;  %v1062_v13 = vmov 0.0|0.0   ;;  %v341_v15 = vld [vmem:[%s1289_s4 + $0x10] sm:$0xff] }
  0x5b   : > { %857 = vmatprep.subr.bf16.mxu0 %v1062_v13  ;;  %v858_v14 = vpack.c.bf16 %v340_v12, %v339_v11  ;;  %v342_v16 = vld [vmem:[%s1289_s4 + $0x18] sm:$0xff]  ;;  %vm1063_vm2 = vmmov 0   ;;  %v343_v18 = vld [vmem:[%s1289_s4 + $0x20] sm:$0xff]  ;;  %v344_v19 = vld [vmem:[%s1289_s4 + $0x28] sm:$0xff]  ;;  %vm354_vm3 = vcmask 523264   ;;  %v1064_v38 = vmov (!%p773_p12), 0.0|0.0  }
  0x5c   : > { %832 = vmatprep.mubr.msk.f32.mxu0 %vm1063_vm2, %v1060_v2  ;;  %v861_v17 = vpack.c.bf16 %v342_v16, %v341_v15  ;;  %v864_v20 = vpack.c.bf16 %v344_v19, %v343_v18  ;;  %v345_v21 = vld [vmem:[%s1289_s4 + $0x30] sm:$0xff]  ;;  %v346_v22 = vld [vmem:[%s1289_s4 + $0x38] sm:$0xff]  ;;  %v777_v26 = vld [vmem:[%s1290_s5] ss:$0 sm:$0xff]  ;;  %875 = vmatprep.subr.bf16.mxu1 (!%p773_p12), %v1064_v38  ;;  %s781_s27 = sshll.u32 (!%p773_p12), %s1134_s18, 7  ;;  %vm1065_vm4 = vmmov (!%p773_p12), 0  }
  0x5d   : > { %859 = vmatpush3.bf16.msra.mxu0 %v858_v14  ;;  %v867_v23 = vpack.c.bf16 %v346_v22, %v345_v21  ;;  %v450_v35 = vld [vmem:[%s1291_s6] sm:$0xff] (!%p773_p12)  ;;  %v451_v36 = vld [vmem:[%s1291_s6 + $0x8] sm:$0xff] (!%p773_p12)  ;;  %v452_v37 = vld [vmem:[%s1291_s6 + $0x10] sm:$0xff] (!%p773_p12)  ;;  %v1066_v41 = vmov (!%p773_p12), 0.0   ;;  %s440_s28 = sld [smem:[#allocation7 + %s781_s27]] (!%p773_p12)  ;;  %s547_s10 = sadd.s32 (!%p773_p12), 1, %s781_s27 }
  0x5e   : > { %860 = vmatprep.subr.bf16.mxu0 %v1062_v13  ;;  %v870_v39 = vpack.c.bf16 (!%p773_p12), %v451_v36, %v450_v35  ;;  %v453_v40 = vld [vmem:[%s1291_s6 + $0x18] sm:$0xff] (!%p773_p12)  ;;  %s441_s29 = sld [smem:[#allocation9 + %s781_s27]] (!%p773_p12)  ;;  %854 = vmatprep.mubr.msk.f32.mxu1 (!%p773_p12), %vm1065_vm4, %v1066_v41  ;;  %s1067_s13 = smov (!%p773_p12), 32   ;;  %v783_v53 = vld [vmem:[%s1292_s7] ss:$0 sm:$0xff] (!%p773_p12) }
  0x5f   : > { %v873_v42 = vpack.c.bf16 (!%p773_p12), %v453_v40, %v452_v37  ;;  %s548_s11 = sld [smem:[#allocation7 + %s547_s10]] (!%p773_p12) }
  0x60   : > { %v333_v10 = vld [vmem:[#allocation4] sm:$0xff]  ;;  %877 = vmatpush3.bf16.msra.mxu1 (!%p773_p12), %v870_v39  ;;  %s549_s12 = sld [smem:[#allocation9 + %s547_s10]] (!%p773_p12) }
  0x61   : > { %335 = vrot.lane.b32.xlu0 %v333_v10, %s1061_s24  ;;  %862 = vmatpush3.bf16.msra.mxu0 %v861_v17 }
  0x62   : > { %863 = vmatprep.subr.bf16.mxu0 %v1062_v13  ;;  %878 = vmatprep.subr.bf16.mxu1 (!%p773_p12), %v1064_v38 }
  0x63   : > { %s782_s14 = sshll.u32 (!%p773_p12), %s440_s28, 3 }
  0x64   : > { %880 = vmatpush3.bf16.msra.mxu1 (!%p773_p12), %v873_v42  ;;  %v445_v43 = vstv (!%p773_p12), %s441_s29  ;;  %s443_s15 = scalar_lea.vmem (!%p773_p12), [#allocation3], %s782_s14  ;;  %s447_s16 = scalar_lea.vmem (!%p773_p12), [#allocation2], %s782_s14 }
  0x65   : > { %865 = vmatpush3.bf16.msra.mxu0 %v864_v20  ;;  %v444_v44 = vld [vmem:[%s443_s15] sm:$0xff] (!%p773_p12)  ;;  %s786_s17 = sshll.u32 (!%p773_p12), %s548_s11, 3 }
  0x66   : > { %866 = vmatprep.subr.bf16.mxu0 %v1062_v13  ;;  %v448_v45 = vld [vmem:[%s447_s16] sm:$0xff] (!%p773_p12)  ;;  %v553_v46 = vstv (!%p773_p12), %s549_s12  ;;  %v446_v47 = vmul.f32 (!%p773_p12), %v445_v43, %v444_v44  ;;  %s551_s0 = scalar_lea.vmem (!%p773_p12), [#allocation3], %s786_s17  ;;  %s555_s19 = scalar_lea.vmem (!%p773_p12), [#allocation2], %s786_s17 }
  0x67   : > { %v449_v48 = vmul.f32 (!%p773_p12), %v448_v45, %v445_v43  ;;  %v552_v49 = vld [vmem:[%s551_s0] sm:$0xff] (!%p773_p12) }
  0x68   : > { %v556_v50 = vld [vmem:[%s555_s19] sm:$0xff] (!%p773_p12)  ;;  %v554_v51 = vmul.f32 (!%p773_p12), %v553_v46, %v552_v49 }
  0x69   : > { %868 = vmatpush3.bf16.msra.mxu0 %v867_v23  ;;  %v557_v52 = vmul.f32 (!%p773_p12), %v556_v50, %v553_v46 }
  0x6a   : > { %869 = vmatprep.subr.bf16.mxu0 (!%p773_p12), %v1064_v38  ;;  %855 = vmatmul.mubr.msk.f32.vlgmr.msra.gmra.mrb[0].mxu1 (!%p773_p12), %vm308_vm1, %v554_v51 }
  0xd3   : > { %v336_v24 = vpop.permute.xlu0 %335 }
  0xd4   : > { %v338_v25 = vsel %vm308_vm1, %v307_v1, %v336_v24 }
  0xd5   : > { %833 = vmatmul.mubr.msk.f32.vlgmr.msra.gmra.mrb[0].mxu0 %vm354_vm3, %v338_v25 }
  0xd6   : > { %843 = vmatprep.mubr.msk.f32.mxu0 (!%p773_p12), %vm1065_vm4, %v1066_v41  ;;  %871 = vmatpush3.bf16.msra.mxu0 (!%p773_p12), %v870_v39 }
  0xd7   : > { %872 = vmatprep.subr.bf16.mxu0 (!%p773_p12), %v1064_v38 }
  0xda   : > { %874 = vmatpush3.bf16.msra.mxu0 (!%p773_p12), %v873_v42 }
 0x13d   : > { %v627_v58 = vpop.f32.mrb[0].mxu1 (!%p773_p12) }
 0x13e   : > { %v628_v59 = vadd.f32 (!%p773_p12), %v783_v53, %v627_v58  ;;  %v856_v60 = vpop.f32.mrb[1].mxu1 (!%p773_p12) }
 0x1a8   : > { %v424_v27 = vpop.f32.mrb[0].mxu0 }
 0x1a9   : > { %v425_v28 = vadd.f32 %v777_v26, %v424_v27  ;;  %v834_v29 = vpop.f32.mrb[1].mxu0  ;;  %844 = vmatmul.mubr.msk.f32.vlgmr.msra.gmra.mrb[0].mxu0 (!%p773_p12), %vm308_vm1, %v446_v47 }
 0x1ab   : > { %v779_v30 = vmul.f32 -1.442695, %v425_v28  ;;  %927 = vtanh.f32 %v425_v28  ;;  %535 = vrot.lane.b32.xlu0 (!%p773_p12), %v425_v28, %s1067_s13 }
 0x1ad   : > { %929 = vpow2.f32 %v779_v30 }
 0x1b5   : > { %v1203_v31 = vpop.eup %927 }
 0x1b7   : > { %v930_v32 = vpop.eup %929 }
 0x1b8   : > { %v431_v33 = vadd.f32 1.0, %v930_v32 }
 0x1ba   : > { %931 = vrcp.f32 %v431_v33 }
 0x1be   : > { %438 = sbr.rel (%p773_p12) target bundleno = 673 (0x2a1), region = 60 }
 0x1c4   : > { %v1205_v34 = vpop.eup %931 }
 0x21d   : > { %v536_v55 = vpop.permute.xlu0 %535 }
 0x21e   : > { %v631_v63 = vadd.f32 %v628_v59, %v536_v55 }
 0x220   : > { %v788_v0 = vmul.f32 -1.442695, %v631_v63 }
 0x27c   : > { %v530_v54 = vpop.f32.mrb[0].mxu0 }
 0x27d   : > { %v531_v56 = vadd.f32 %v783_v53, %v530_v54  ;;  %v845_v57 = vpop.f32.mrb[1].mxu0 }
 0x27f   : > { %v538_v61 = vadd.f32 %v536_v55, %v531_v56 }
 0x281   : > { %v785_v62 = vmul.f32 -1.442695, %v538_v61 }
 0x283   : > { %933 = vpow2.f32 %v785_v62 }
 0x284   : > { %935 = vpow2.f32 %v788_v0 }
 0x28d   : > { %v934_v1 = vpop.eup %933 }
 0x28e   : > { %v542_v2 = vadd.f32 1.0, %v934_v1  ;;  %v936_v3 = vpop.eup %935 }
 0x28f   : > { %v635_v4 = vadd.f32 1.0, %v936_v3 }
 0x290   : > { %937 = vrcp.f32 %v542_v2 }
 0x291   : > { %939 = vrcp.f32 %v635_v4 }
 0x29a   : > { %v938_v5 = vpop.eup %937 }
 0x29b   : > { %v545_v6 = vmul.f32 %v938_v5, %v449_v48  ;;  %v940_v7 = vpop.eup %939 }
 0x29c   : > { %v638_v8 = vmul.f32 %v940_v7, %v557_v52 }
 0x29e   : > { %v639_v9 = vadd.f32 %v638_v8, %v545_v6 }
 0x2a0   : > { %640 = vst.msk [vmem:[#allocation5] sm:$0xff] %vm308_vm1, %v639_v9 }
 0x2a1 PF: > { %s1068_s22 = smov 64   ;;  %s789_s23 = sshll.u32 %s1134_s18, 3 }
 0x2a2   : > { %642 = vrot.lane.b32.xlu0 %v1203_v31, %s1068_s22  ;;  %s655_s25 = scalar_lea.vmem [#allocation2], %s789_s23  ;;  %s1069_s26 = smov 96  }
 0x2a3   : > { %s661_s30 = scalar_lea.vmem [#allocation3], %s789_s23  ;;  %p790_p13 = scmp.ne.s32.totalorder %s1134_s18, 6 }
 0x2a7   : > { %v646_v10 = vld [vmem:[#allocation5] sm:$0xff] }
 0x314   : > { %v643_v11 = vpop.permute.xlu0 %642 }
 0x315   : > { %v645_v12 = vmul.f32 %v1205_v34, %v643_v11 }
 0x317   : > { %v647_v13 = vadd.f32 %v646_v10, %v645_v12 }
 0x319   : > { %941 = vtanh.f32 %v647_v13  ;;  %656 = vst.msk [vmem:[%s655_s25] sm:$0xff] %vm308_vm1, %v647_v13  ;;  %667 = vst.msk [vmem:[#allocation12] sm:$0xff] (!%p790_p13), %vm308_vm1, %v647_v13 }
 0x323   : > { %v942_v14 = vpop.eup %941 }
 0x324   : > { %650 = vrot.lane.b32.xlu0 %v942_v14, %s1061_s24 }
 0x396   : > { %v651_v15 = vpop.permute.xlu0 %650 }
 0x397   : > { %v653_v16 = vmul.f32 %v1205_v34, %v651_v15 }
 0x399   : > { %658 = vrot.lane.b32.xlu1 %v653_v16, %s1069_s26 }
 0x406   : > { %666 = sbr.rel (%p790_p13) target bundleno = 1037 (0x40d), region = 64 }
 0x40b   : > { %v659_v17 = vpop.permute.xlu1 %658 }
 0x40c   : > { %662 = vst.msk [vmem:[%s661_s30] sm:$0xff] %vm308_vm1, %v659_v17  ;;  %668 = vst.msk [vmem:[#allocation13] sm:$0xff] (!%p790_p13), %vm308_vm1, %v659_v17 }
 0x40d PF: > { %p899_p0 = scmp.eq.s32.totalorder %s1134_s18, 6  ;;  %s1070_s24 = smov [#allocation12]  }
 0x40e   : > { %s676_s27 = sshll.u32 %s1070_s24, 4  ;;  %s1071_s28 = smov [#allocation13]   ;;  %s677_s27 = int_to_ptr.vmem [resolvable:$true] %s676_s27 }
 0x40f   : > { %s687_s29 = sshll.u32 %s1071_s28, 4  ;;  %s982_s10 = scalar_lea.vmem %s677_s27, 128  ;;  %s688_s29 = int_to_ptr.vmem [resolvable:$true] %s687_s29 }
 0x410   : > { %p983_p1 = scmp.ne.s32.totalorder %s677_s27, %s982_s10  ;;  %p989_p4 = scmp.lt.s32.totalorder %s677_s27, %s677_s27 }
 0x411   : > { %p990_p5 = scmp.lt.s32.totalorder %s982_s10, %s982_s10 }
 0x412   : > { %p984_p2 = pnand %p983_p1, %p899_p0 }
 0x413   : > { %p991_p6 = por %p990_p5, %p989_p4 }
 0x414   : > { %p985_p3 = pneg %p984_p2 }
 0x416   : > { %p992_p7 = pnand %p991_p6, %p985_p3 }
 0x418   : > { %995 = shalt.err (!%p992_p7)
}
 0x419   : > { %s996_s13 = scalar_lea.hbm %s1293_s8, 128 }
 0x41a   : > { %p997_p8 = scmp.ne.s32.totalorder %s1293_s8, %s996_s13  ;;  %p1002_p11 = scmp.lt.u32.totalorder %s996_s13, %s1293_s8 }
 0x41c   : > { %p998_p9 = pnand %p997_p8, %p899_p0 }
 0x41e   : > { %p999_p10 = pneg %p998_p9 }
 0x420   : > { %p1004_p12 = pnand %p1002_p11, %p999_p10 }
 0x422   : > { %1007 = shalt.err (!%p1004_p12)
}
 0x423   : > { %886 = dma.vmem_to_hbm [thread:$0]  (%p899_p0), %s677_s27, 128, %s1293_s8, [#allocation10]  }
 0x424   : > { %s1008_s20 = scalar_lea.vmem %s688_s29, 128  ;;  %p1015_p3 = scmp.lt.s32.totalorder %s688_s29, %s688_s29 }
 0x425   : > { %p1009_p13 = scmp.ne.s32.totalorder %s688_s29, %s1008_s20  ;;  %p1016_p4 = scmp.lt.s32.totalorder %s1008_s20, %s1008_s20 }
 0x427   : > { %p1010_p1 = pnand %p1009_p13, %p899_p0  ;;  %p1017_p5 = por %p1016_p4, %p1015_p3 }
 0x429   : > { %p1011_p2 = pneg %p1010_p1 }
 0x42b   : > { %p1018_p6 = pnand %p1017_p5, %p1011_p2 }
 0x42d   : > { %1021 = shalt.err (!%p1018_p6)
}
 0x42e   : > { %s1022_s23 = scalar_lea.hbm %s1294_s9, 128 }
 0x42f   : > { %p1023_p7 = scmp.ne.s32.totalorder %s1294_s9, %s1022_s23  ;;  %p1028_p10 = scmp.lt.u32.totalorder %s1022_s23, %s1294_s9 }
 0x431   : > { %p1024_p8 = pnand %p1023_p7, %p899_p0 }
 0x433   : > { %p1025_p9 = pneg %p1024_p8 }
 0x435   : > { %p1030_p11 = pnand %p1028_p10, %p1025_p9 }
 0x437   : > { %1033 = shalt.err (!%p1030_p11)
}
 0x438   : > { %888 = dma.vmem_to_hbm [thread:$0]  (%p899_p0), %s688_s29, 128, %s1294_s9, [#allocation14]  }
 0x439   : > { %1045 = dma.done.wait (%p899_p0), [#allocation10], 128  }
 0x43a   : > { %1047 = vsyncadd (%p899_p0), [#allocation10], 4294967168 }
 0x43b   : > { %1049 = dma.done.wait (%p899_p0), [#allocation14], 128  }
 0x43c   : > { %1051 = vsyncadd (%p899_p0), [#allocation14], 4294967168 }
 0x43d PF: > { %s33_s1 = sadd.s32 1, %s1054_s1  }
 0x43e   : > { %p30_p12 = scmp.ge.s32.totalorder %s33_s1, 9  }
 0x440   :  { %32 = sbr.rel (!%p30_p12) target bundleno = 28 (0x1c), region = 108 }
 0x447   :  { %704 = vsyncpa [#allocation10], 1 }
 0x448   :  { %706 = vsyncpa [#allocation10 + $0x1], 1 }
 0x449   :  { %707 = vsyncpa [#allocation14], 1 }
 0x44a   :  { %708 = vsyncpa [#allocation11], 1 }
 0x44b   :  { %710 = vsyncpa [#allocation11 + $0x1], 1 }

</bundles_post_ra>
